<compile_context>
chip_gen: v7x
topology: tpu7x:2x2x1
jax: 0.10.0
libtpu: 0.0.40
codegen_flags: <defaults>
</compile_context>

<pallas_src>
import functools

import jax
import jax.numpy as jnp
from jax.experimental import pallas as pl
from jax.experimental.pallas import tpu as pltpu


def _round_up(x: int, m: int) -> int:
    return (x + m - 1) // m * m


def _pad_to(arr, shape):
    pads = [(0, s - d) for d, s in zip(arr.shape, shape)]
    if any(p[1] for p in pads):
        return jnp.pad(arr, pads)
    return arr


# --------------------------------------------------------------------------
# Kernels
# --------------------------------------------------------------------------

_GELU_C = 0.7978845608028654   # sqrt(2/pi)
_GELU_A = 0.044715


def _gelu_f32(h):
    # tanh-GELU, algebraically identical to the PyTorch module; factored so the
    # inner polynomial costs one fewer VPU multiply, tanh goes to the EUP slot.
    c = jnp.float32(_GELU_C)
    a = jnp.float32(_GELU_A)
    return 0.5 * h * (1.0 + jnp.tanh(c * h * (1.0 + a * (h * h))))


def ffn_kernel_fused(x_ref, w1_ref, b1_ref, w2_ref, b2_ref, o_ref):
    """Whole hidden dim resident: 1-D grid over token tiles, no scratch/RMW."""
    h = jnp.dot(x_ref[...], w1_ref[...], preferred_element_type=jnp.float32)
    h = h + b1_ref[...].astype(jnp.float32)
    g = _gelu_f32(h)
    out = jnp.dot(g.astype(w2_ref.dtype), w2_ref[...],
                  preferred_element_type=jnp.float32)
    o_ref[...] = (out + b2_ref[...].astype(jnp.float32)).astype(o_ref.dtype)


def ffn_kernel_acc(x_ref, w1_ref, b1_ref, w2_ref, b2_ref, o_ref, acc_ref):
    """Hidden axis tiled: grid = (token tiles, hidden tiles), f32 accumulator."""
    k = pl.program_id(1)

    @pl.when(k == 0)
    def _():
        # Fold b2 into the accumulator init (removes the epilogue add + extra pass).
        acc_ref[...] = jnp.broadcast_to(b2_ref[...].astype(jnp.float32),
                                        acc_ref.shape)

    h = jnp.dot(x_ref[...], w1_ref[...], preferred_element_type=jnp.float32)
    h = h + b1_ref[...].astype(jnp.float32)
    g = _gelu_f32(h)
    acc_ref[...] += jnp.dot(g.astype(w2_ref.dtype), w2_ref[...],
                            preferred_element_type=jnp.float32)

    @pl.when(k == pl.num_programs(1) - 1)
    def _():
        o_ref[...] = acc_ref[...].astype(o_ref.dtype)


# --------------------------------------------------------------------------
# Chip detection / budgets
# --------------------------------------------------------------------------

@functools.lru_cache(maxsize=1)
def _chip_config():
    """Returns (generation, vmem_bytes_per_TensorCore, tensorcores_per_chip)."""
    kind = ""
    try:
        kind = jax.devices()[0].device_kind.lower()
    except Exception:
        pass
    gen = 6
    for g in (7, 6, 5, 4, 3, 2):
        if f"v{g}" in kind:
            gen = g
            break
    tcs = 2 if gen >= 7 else 1
    vmem = (64 if gen >= 7 else 128) * 1024 * 1024   # per-TC table value
    try:
        cap = int(getattr(pltpu.get_tpu_info(), "vmem_capacity_bytes", 0) or 0)
        if cap > 0:
            if tcs > 1 and cap > 64 * 1024 * 1024:
                cap //= tcs                           # reported per-chip -> per-TC
            vmem = min(vmem, cap)
    except Exception:
        pass
    return gen, vmem, tcs


# --------------------------------------------------------------------------
# Wrapper
# --------------------------------------------------------------------------

def feed_forward(x, w1, b1, w2, b2, *, use_bf16=False,
                 tm_max=None, vmem_budget_bytes=None):
    """x: (..., emb_dim). Weights stored (in, out), transposed vs nn.Linear.

    use_bf16: opt-in cast of x/W1/W2 to bf16 for the MXU (f32 accumulation and
    f32 GELU are kept). Off by default: numerics change slightly.
    """
    emb = x.shape[-1]
    hidden = w1.shape[1]
    lead_shape = x.shape[:-1]
    out_dtype = x.dtype

    x2d = x.reshape(-1, emb)
    m = x2d.shape[0]

    if use_bf16:
        if x2d.dtype == jnp.float32:
            x2d = x2d.astype(jnp.bfloat16)
        if w1.dtype == jnp.float32:
            w1 = w1.astype(jnp.bfloat16)
        if w2.dtype == jnp.float32:
            w2 = w2.astype(jnp.bfloat16)

    xbytes = jnp.dtype(x2d.dtype).itemsize
    wbytes = jnp.dtype(w1.dtype).itemsize
    obytes = jnp.dtype(out_dtype).itemsize

    gen, vmem_per_tc, tcs = _chip_config()
    align = 128 if gen <= 5 else 256                        # MXU-friendly th width
    tm_target = tm_max or {5: 512, 6: 768, 7: 512}.get(gen, 512)

    limit_frac = 0.62 if gen >= 7 else 0.72
    vmem_limit_bytes = int(vmem_per_tc * limit_frac)
    if vmem_budget_bytes is None:
        vmem_budget_bytes = int(vmem_limit_bytes * 0.85)

    # ---- token tile ----
    m_p8 = _round_up(m, 8)
    tm = max(8, (min(tm_target, m_p8) // 8) * 8)
    if tcs >= 2 and m_p8 >= 16:
        # Guarantee >= 2 token tiles so the parallel axis shards across both TCs.
        tm = min(tm, max(8, (m_p8 // 2 // 8) * 8))

    # ---- honest VMEM usage estimate ----
    def usage(tm_, th_, multi_k):
        weights = 2 * 2 * emb * th_ * wbytes             # W1 + W2 tiles, double-buffered
        biases = 2 * (th_ + emb) * 4                     # b1/b2 tiles, double-buffered
        io = 2 * tm_ * emb * (xbytes + obytes)           # x + out tiles, double-buffered
        h_f32 = tm_ * th_ * 4                            # pre-GELU f32
        g_f32 = tm_ * th_ * 4                            # post-GELU f32
        g_cast = tm_ * th_ * wbytes if wbytes < 4 else 0 # bf16 copy fed to the MXU
        dot_tmp = tm_ * emb * 4                          # 2nd-matmul f32 result
        acc = tm_ * emb * 4 if multi_k else 0
        total = weights + biases + io + h_f32 + g_f32 + g_cast + dot_tmp + acc
        return int(total * 1.15)                         # compiler internal scratch

    # ---- hidden tiling: prefer fully resident; shrink th first, then tm ----
    th = hidden
    multi_k = False
    if usage(tm, hidden, False) > vmem_budget_bytes and hidden > align:
        multi_k = True
        th = _round_up(hidden, align)
        while usage(tm, th, True) > vmem_budget_bytes and th > align:
            th = max(align, _round_up(th // 2, align))
        if th >= hidden:                                  # tiling didn't help
            th, multi_k = hidden, False
    while usage(tm, th, multi_k) > vmem_budget_bytes and tm > 8:
        tm = max(8, ((tm // 2) // 8) * 8)

    # Prefer a tm that divides round_up(m, 8): host-side pad/slice becomes a no-op.
    if m_p8 % tm != 0:
        lo = max(8, (int(tm * 0.75) // 8) * 8)
        for cand in range(tm, lo - 1, -8):
            if cand > 0 and m_p8 % cand == 0:
                tm = cand
                break

    m_p = _round_up(m, tm)
    h_p = _round_up(hidden, th) if multi_k else hidden
    n_tok_tiles = m_p // tm
    n_k = h_p // th

    # ---- operand padding (exact: padded W1 cols / W2 rows are zero; GELU(0)=0) ----
    x_pad = _pad_to(x2d, (m_p, emb))
    w1_pad = _pad_to(w1, (emb, h_p))
    b1_pad = _pad_to(b1.reshape(1, hidden), (1, h_p))
    w2_pad = _pad_to(w2, (h_p, emb))
    b2_pad = b2.reshape(1, emb)

    # ---- cost estimate (includes the per-token-tile weight re-stream) ----
    weight_stream = n_tok_tiles if n_k > 1 else 1
    cost = pl.CostEstimate(
        flops=2 * 2 * m_p * emb * h_p,
        transcendentals=m_p * h_p,
        bytes_accessed=(2 * m_p * emb) * max(xbytes, obytes)
        + weight_stream * (2 * emb * h_p) * wbytes
        + (h_p + emb) * 4,
    )

    if not multi_k:
        grid_spec = pltpu.PrefetchScalarGridSpec(
            num_scalar_prefetch=0,
            grid=(n_tok_tiles,),
            in_specs=[
                pl.BlockSpec((tm, emb), lambda i: (i, 0)),        # x tile
                pl.BlockSpec((emb, hidden), lambda i: (0, 0)),    # W1 (resident)
                pl.BlockSpec((1, hidden), lambda i: (0, 0)),      # b1
                pl.BlockSpec((hidden, emb), lambda i: (0, 0)),    # W2 (resident)
                pl.BlockSpec((1, emb), lambda i: (0, 0)),         # b2
            ],
            out_specs=pl.BlockSpec((tm, emb), lambda i: (i, 0)),
            scratch_shapes=[],
        )
        kernel = ffn_kernel_fused
        dims = ("parallel",)
    else:
        grid_spec = pltpu.PrefetchScalarGridSpec(
            num_scalar_prefetch=0,
            grid=(n_tok_tiles, n_k),
            in_specs=[
                pl.BlockSpec((tm, emb), lambda i, k: (i, 0)),     # x tile (resident over k)
                pl.BlockSpec((emb, th), lambda i, k: (0, k)),     # W1 hidden-slice
                pl.BlockSpec((1, th), lambda i, k: (0, k)),       # b1 hidden-slice
                pl.BlockSpec((th, emb), lambda i, k: (k, 0)),     # W2 hidden-slice
                pl.BlockSpec((1, emb), lambda i, k: (0, 0)),      # b2
            ],
            out_specs=pl.BlockSpec((tm, emb), lambda i, k: (i, 0)),
            scratch_shapes=[pltpu.VMEM((tm, emb), jnp.float32)],
        )
        kernel = ffn_kernel_acc
        dims = ("parallel", "arbitrary")

    out_pad = pl.pallas_call(
        kernel,
        out_shape=jax.ShapeDtypeStruct((m_p, emb), out_dtype),
        grid_spec=grid_spec,
        compiler_params=pltpu.CompilerParams(
            dimension_semantics=dims,
            vmem_limit_bytes=vmem_limit_bytes,
        ),
        cost_estimate=cost,
    )(x_pad, w1_pad, b1_pad, w2_pad, b2_pad)

    out2d = out_pad if m_p == m else out_pad[:m]
    return out2d.reshape(*lead_shape, emb)


def feed_forward_ref(x, w1, b1, w2, b2):
    """Pure-JAX reference of the PyTorch forward."""
    xf = x.astype(jnp.float32)
    h = xf @ w1.astype(jnp.float32) + b1.astype(jnp.float32)
    c = jnp.sqrt(2.0 / jnp.pi)
    g = 0.5 * h * (1.0 + jnp.tanh(c * (h + 0.044715 * h ** 3)))
    return (g @ w2.astype(jnp.float32) + b2.astype(jnp.float32)).astype(x.dtype)


if __name__ == "__main__":
    # cfg = {'emb_dim': 32} -> hidden = 4 * 32 = 128
    emb_dim = 32
    hidden = 4 * emb_dim
    batch, seq = 2, 8

    key = jax.random.PRNGKey(0)
    kx, kw1, kb1, kw2, kb2 = jax.random.split(key, 5)

    x = jax.random.normal(kx, (batch, seq, emb_dim), dtype=jnp.float32)
    # Parameters stored transposed as (in, out) relative to nn.Linear's (out, in).
    w1 = jax.random.normal(kw1, (emb_dim, hidden), dtype=jnp.float32) * 0.02
    b1 = jax.random.normal(kb1, (hidden,), dtype=jnp.float32) * 0.02
    w2 = jax.random.normal(kw2, (hidden, emb_dim), dtype=jnp.float32) * 0.02
    b2 = jax.random.normal(kb2, (emb_dim,), dtype=jnp.float32) * 0.02

    out = feed_forward(x, w1, b1, w2, b2)
    out = jax.block_until_ready(out)

    ref = feed_forward_ref(x, w1, b1, w2, b2)
    assert out.shape == x.shape and out.dtype == x.dtype
    # Tolerance covers default-precision f32 matmuls on the MXU (bf16 passes with
    # f32 accumulation); the math itself is exact vs the PyTorch formula.
    assert jnp.allclose(out, ref, atol=2e-4, rtol=2e-3), "mismatch vs reference"

    print("KERNEL_OK")
</pallas_src>

<mosaic_0001>
module attributes {stable_mosaic.version = 11 : i64} {
  func.func @ffn_kernel_fused(%arg0: i32, %arg1: memref<16x32xf32, #tpu.memory_space<vmem>>, %arg2: memref<32x128xf32, #tpu.memory_space<vmem>>, %arg3: memref<1x128xf32, #tpu.memory_space<vmem>>, %arg4: memref<128x32xf32, #tpu.memory_space<vmem>>, %arg5: memref<1x32xf32, #tpu.memory_space<vmem>>, %arg6: memref<16x32xf32, #tpu.memory_space<vmem>>) attributes {dimension_semantics = [#tpu.dimension_semantics<parallel>], iteration_bounds = array<i64: 1>, scalar_prefetch = 0 : i64, scratch_operands = 0 : i64, tpu.core_type = #tpu.core_type<tc>, window_params = [{transform_indices = @transform_0, window_bounds = array<i64: 16, 32>}, {pipeline_mode = #tpu.pipeline_mode<synchronous>, transform_indices = @transform_1, window_bounds = array<i64: 32, 128>}, {pipeline_mode = #tpu.pipeline_mode<synchronous>, transform_indices = @transform_2, window_bounds = array<i64: 1, 128>}, {pipeline_mode = #tpu.pipeline_mode<synchronous>, transform_indices = @transform_3, window_bounds = array<i64: 128, 32>}, {pipeline_mode = #tpu.pipeline_mode<synchronous>, transform_indices = @transform_4, window_bounds = array<i64: 1, 32>}, {transform_indices = @transform_5, window_bounds = array<i64: 16, 32>}]} {
    %c0 = arith.constant 0 : index
    %c0_0 = arith.constant 0 : index
    %0 = vector.load %arg1[%c0, %c0_0] : memref<16x32xf32, #tpu.memory_space<vmem>>, vector<16x32xf32>
    %c0_1 = arith.constant 0 : index
    %c0_2 = arith.constant 0 : index
    %1 = vector.load %arg2[%c0_1, %c0_2] : memref<32x128xf32, #tpu.memory_space<vmem>>, vector<32x128xf32>
    %cst = arith.constant dense<0.000000e+00> : vector<16x128xf32>
    %2 = tpu.matmul %0, %1, %cst {dimension_numbers = #tpu.dot_dimension_numbers<[1], [0], [0], [1], [0, 0, 1, 1], [], []>} : vector<16x32xf32>, vector<32x128xf32>, vector<16x128xf32> -> vector<16x128xf32>
    %c0_3 = arith.constant 0 : index
    %c0_4 = arith.constant 0 : index
    %3 = vector.load %arg3[%c0_3, %c0_4] : memref<1x128xf32, #tpu.memory_space<vmem>>, vector<1x128xf32>
    %4 = vector.broadcast %3 : vector<1x128xf32> to vector<16x128xf32>
    %5 = arith.addf %2, %4 : vector<16x128xf32>
    %cst_5 = arith.constant 5.000000e-01 : f32
    %6 = vector.broadcast %cst_5 : f32 to vector<16x128xf32>
    %7 = arith.mulf %6, %5 : vector<16x128xf32>
    %cst_6 = arith.constant 0.797884583 : f32
    %8 = vector.broadcast %cst_6 : f32 to vector<16x128xf32>
    %9 = arith.mulf %8, %5 : vector<16x128xf32>
    %10 = arith.mulf %5, %5 : vector<16x128xf32>
    %cst_7 = arith.constant 4.471500e-02 : f32
    %11 = vector.broadcast %cst_7 : f32 to vector<16x128xf32>
    %12 = arith.mulf %11, %10 : vector<16x128xf32>
    %cst_8 = arith.constant 1.000000e+00 : f32
    %13 = vector.broadcast %cst_8 : f32 to vector<16x128xf32>
    %14 = arith.addf %13, %12 : vector<16x128xf32>
    %15 = arith.mulf %9, %14 : vector<16x128xf32>
    %16 = math.tanh %15 : vector<16x128xf32>
    %cst_9 = arith.constant 1.000000e+00 : f32
    %17 = vector.broadcast %cst_9 : f32 to vector<16x128xf32>
    %18 = arith.addf %17, %16 : vector<16x128xf32>
    %19 = arith.mulf %7, %18 : vector<16x128xf32>
    %c0_10 = arith.constant 0 : index
    %c0_11 = arith.constant 0 : index
    %20 = vector.load %arg4[%c0_10, %c0_11] : memref<128x32xf32, #tpu.memory_space<vmem>>, vector<128x32xf32>
    %cst_12 = arith.constant dense<0.000000e+00> : vector<16x32xf32>
    %21 = tpu.matmul %19, %20, %cst_12 {dimension_numbers = #tpu.dot_dimension_numbers<[1], [0], [0], [1], [0, 0, 1, 1], [], []>} : vector<16x128xf32>, vector<128x32xf32>, vector<16x32xf32> -> vector<16x32xf32>
    %c0_13 = arith.constant 0 : index
    %c0_14 = arith.constant 0 : index
    %22 = vector.load %arg5[%c0_13, %c0_14] : memref<1x32xf32, #tpu.memory_space<vmem>>, vector<1x32xf32>
    %23 = vector.broadcast %22 : vector<1x32xf32> to vector<16x32xf32>
    %24 = arith.addf %21, %23 : vector<16x32xf32>
    %c0_15 = arith.constant 0 : index
    %c0_16 = arith.constant 0 : index
    %25 = vector.load %arg6[%c0_15, %c0_16] : memref<16x32xf32, #tpu.memory_space<vmem>>, vector<16x32xf32>
    tpu.vector_store %arg6[%c0_15, %c0_16], %24 {strides = array<i32>} : memref<16x32xf32, #tpu.memory_space<vmem>>, vector<16x32xf32>,
    return
  }
  func.func @transform_0(%arg0: i32) -> (i32, i32) {
    %c0_i32 = arith.constant 0 : i32
    %c0_i32_0 = arith.constant 0 : i32
    return %arg0, %c0_i32 : i32, i32
  }
  func.func @transform_1(%arg0: i32) -> (i32, i32) {
    %c0_i32 = arith.constant 0 : i32
    %c0_i32_0 = arith.constant 0 : i32
    %c0_i32_1 = arith.constant 0 : i32
    return %c0_i32, %c0_i32_0 : i32, i32
  }
  func.func @transform_2(%arg0: i32) -> (i32, i32) {
    %c0_i32 = arith.constant 0 : i32
    %c0_i32_0 = arith.constant 0 : i32
    %c0_i32_1 = arith.constant 0 : i32
    return %c0_i32, %c0_i32_0 : i32, i32
  }
  func.func @transform_3(%arg0: i32) -> (i32, i32) {
    %c0_i32 = arith.constant 0 : i32
    %c0_i32_0 = arith.constant 0 : i32
    %c0_i32_1 = arith.constant 0 : i32
    return %c0_i32, %c0_i32_0 : i32, i32
  }
  func.func @transform_4(%arg0: i32) -> (i32, i32) {
    %c0_i32 = arith.constant 0 : i32
    %c0_i32_0 = arith.constant 0 : i32
    %c0_i32_1 = arith.constant 0 : i32
    return %c0_i32, %c0_i32_0 : i32, i32
  }
  func.func @transform_5(%arg0: i32) -> (i32, i32) {
    %c0_i32 = arith.constant 0 : i32
    %c0_i32_0 = arith.constant 0 : i32
    return %arg0, %c0_i32 : i32, i32
  }
}

</mosaic_0001>

<bundles_post_ra>
// kernel: tpu_custom_call.1
= control target key start
LH: loop header
LB: loop body
LE: loop exit
PB: predicated region body
PF: predicated region fallthrough
CT: control target
= control target key end

     0   :  { %10 = vsyncpa [#allocation3], 0  ;;  %s716_s0 = inlined_call_operand.hbm [shape: f32[16,32], index: 0, kind: input, shape index: {}]   ;;  %s717_s1 = inlined_call_operand.hbm [shape: f32[32,128], index: 1, kind: input, shape index: {}]   ;;  %s718_s2 = inlined_call_operand.hbm [shape: f32[1,128], index: 2, kind: input, shape index: {}]   ;;  %s719_s3 = inlined_call_operand.hbm [shape: f32[128,32], index: 3, kind: input, shape index: {}]   ;;  %s720_s4 = inlined_call_operand.hbm [shape: f32[1,32], index: 4, kind: input, shape index: {}]   ;;  %s721_s5 = inlined_call_operand.hbm [shape: f32[16,32], index: 5, kind: output, shape index: {}]  }
   0x1   :  { %11 = vsyncpa [#allocation6], 0 }
   0x2   :  { %12 = vsyncpa [#allocation9], 0 }
   0x3   :  { %13 = vsyncpa [#allocation4], 0  ;;  %s583_s18 = smov [#allocation5]   ;;  %s584_s20 = smov [#allocation8]  }
   0x4   :  { %s31_s19 = sshll.u32 %s583_s18, 4  ;;  %s53_s21 = sshll.u32 %s584_s20, 4  ;;  %s32_s19 = int_to_ptr.vmem [resolvable:$true] %s31_s19  ;;  %s621_s21 = int_to_ptr.vmem [resolvable:$true] %s53_s21 }
   0x5   :  { %s443_s24 = scalar_lea.hbm %s717_s1, 512 }
   0x6   :  { %p444_p0 = scmp.ne.s32.totalorder %s717_s1, %s443_s24  ;;  %p447_p1 = scmp.lt.u32.totalorder %s443_s24, %s717_s1 }
   0x8   :  { %p449_p2 = pnand %p447_p1, %p444_p0 }
   0xa   :  { %452 = shalt.err (!%p449_p2)
}
   0xb   :  { %s453_s29 = scalar_lea.vmem %s32_s19, 512  ;;  %p458_p4 = scmp.lt.s32.totalorder %s32_s19, %s32_s19 }
   0xc   :  { %p454_p3 = scmp.ne.s32.totalorder %s32_s19, %s453_s29  ;;  %p459_p5 = scmp.lt.s32.totalorder %s453_s29, %s453_s29 }
   0xe   :  { %p460_p6 = por %p459_p5, %p458_p4 }
  0x10   :  { %p461_p7 = pnand %p460_p6, %p454_p3 }
  0x12   :  { %464 = shalt.err (!%p461_p7)
}
  0x13   :  { %s585_s30 = smov 128   ;;  %s586_s6 = smov 8  }
  0x14   :  { %37 = dma.hbm_to_vmem [thread:$0]  %s717_s1, 512, %s32_s19, [#allocation6], %s585_s30, %s585_s30, %s586_s6  }
  0x15   :  { %s465_s11 = scalar_lea.hbm %s719_s3, 2048 }
  0x16   :  { %p466_p8 = scmp.ne.s32.totalorder %s719_s3, %s465_s11  ;;  %p469_p9 = scmp.lt.u32.totalorder %s465_s11, %s719_s3 }
  0x18   :  { %p471_p10 = pnand %p469_p9, %p466_p8 }
  0x1a   :  { %474 = shalt.err (!%p471_p10)
}
  0x1b   :  { %s475_s16 = scalar_lea.vmem %s621_s21, 2048  ;;  %p480_p12 = scmp.lt.s32.totalorder %s621_s21, %s621_s21 }
  0x1c   :  { %p476_p11 = scmp.ne.s32.totalorder %s621_s21, %s475_s16  ;;  %p481_p13 = scmp.lt.s32.totalorder %s475_s16, %s475_s16 }
  0x1e   :  { %p482_p0 = por %p481_p13, %p480_p12 }
  0x20   :  { %p483_p1 = pnand %p482_p0, %p476_p11 }
  0x22   :  { %486 = shalt.err (!%p483_p1)
}
  0x23   :  { %59 = dma.hbm_to_vmem [thread:$0]  %s719_s3, 2048, %s621_s21, [#allocation9], %s585_s30, %s585_s30, %s586_s6  }
  0x24   :  { %s587_s18 = smov [#allocation2]   ;;  %s588_s20 = smov [#allocation7]  }
  0x25   :  { %s19_s19 = sshll.u32 %s587_s18, 4  ;;  %s44_s22 = sshll.u32 %s588_s20, 4  ;;  %s20_s19 = int_to_ptr.vmem [resolvable:$true] %s19_s19  ;;  %s45_s22 = int_to_ptr.vmem [resolvable:$true] %s44_s22 }
  0x26   :  { %s487_s25 = scalar_lea.hbm %s716_s0, 256 }
  0x27   :  { %p488_p2 = scmp.ne.s32.totalorder %s716_s0, %s487_s25  ;;  %p491_p3 = scmp.lt.u32.totalorder %s487_s25, %s716_s0 }
  0x29   :  { %p493_p4 = pnand %p491_p3, %p488_p2 }
  0x2b   :  { %496 = shalt.err (!%p493_p4)
}
  0x2c   :  { %s497_s3 = scalar_lea.vmem %s20_s19, 256  ;;  %p502_p6 = scmp.lt.s32.totalorder %s20_s19, %s20_s19 }
  0x2d   :  { %p498_p5 = scmp.ne.s32.totalorder %s20_s19, %s497_s3  ;;  %p503_p7 = scmp.lt.s32.totalorder %s497_s3, %s497_s3 }
  0x2f   :  { %p504_p8 = por %p503_p7, %p502_p6 }
  0x31   :  { %p505_p9 = pnand %p504_p8, %p498_p5 }
  0x33   :  { %508 = shalt.err (!%p505_p9)
}
  0x34   :  { %25 = dma.hbm_to_vmem [thread:$0]  %s716_s0, 256, %s20_s19, [#allocation3], %s585_s30, %s585_s30, %s586_s6  }
  0x35   :  { %s509_s10 = scalar_lea.hbm %s718_s2, 16 }
  0x36   :  { %p510_p10 = scmp.ne.s32.totalorder %s718_s2, %s509_s10  ;;  %p513_p11 = scmp.lt.u32.totalorder %s509_s10, %s718_s2 }
  0x38   :  { %p515_p12 = pnand %p513_p11, %p510_p10 }
  0x3a   :  { %518 = shalt.err (!%p515_p12)
}
  0x3b   :  { %s519_s15 = scalar_lea.vmem %s45_s22, 16  ;;  %s523_s16 = scalar_lea.vmem %s45_s22, 32 }
  0x3c   :  { %p520_p13 = scmp.ne.s32.totalorder %s45_s22, %s519_s15  ;;  %p524_p0 = scmp.lt.s32.totalorder %s45_s22, %s45_s22 }
  0x3d   :  { %p525_p1 = scmp.lt.s32.totalorder %s523_s16, %s519_s15 }
  0x3f   :  { %p526_p2 = por %p525_p1, %p524_p0 }
  0x41   :  { %p527_p3 = pnand %p526_p2, %p520_p13 }
  0x43   :  { %530 = shalt.err (!%p527_p3)
}
  0x44   :  { %47 = dma.hbm_to_vmem [thread:$0]  %s718_s2, 16, %s45_s22, [#allocation6]  }
  0x45   :  { %s589_s17 = smov [#allocation10]   ;;  %s531_s23 = scalar_lea.hbm %s720_s4, 16 }
  0x46   :  { %s66_s18 = sshll.u32 %s589_s17, 4  ;;  %p532_p4 = scmp.ne.s32.totalorder %s720_s4, %s531_s23  ;;  %s67_s18 = int_to_ptr.vmem [resolvable:$true] %s66_s18 }
  0x47   :  { %p535_p5 = scmp.lt.u32.totalorder %s531_s23, %s720_s4 }
  0x49   :  { %p537_p6 = pnand %p535_p5, %p532_p4 }
  0x4b   :  { %540 = shalt.err (!%p537_p6)
}
  0x4c   :  { %s541_s28 = scalar_lea.vmem %s67_s18, 16  ;;  %s545_s2 = scalar_lea.vmem %s67_s18, 32 }
  0x4d   :  { %p542_p7 = scmp.ne.s32.totalorder %s67_s18, %s541_s28  ;;  %p546_p8 = scmp.lt.s32.totalorder %s67_s18, %s67_s18 }
  0x4e   :  { %p547_p9 = scmp.lt.s32.totalorder %s545_s2, %s541_s28 }
  0x50   :  { %p548_p10 = por %p547_p9, %p546_p8 }
  0x52   :  { %p549_p11 = pnand %p548_p10, %p542_p7 }
  0x54   :  { %552 = shalt.err (!%p549_p11)
}
  0x55   :  { %69 = dma.hbm_to_vmem [thread:$0]  %s720_s4, 16, %s67_s18, [#allocation9]  }
  0x56   :  { %575 = dma.done.wait [#allocation3], 256  }
  0x57   :  { %576 = vsyncadd [#allocation3], 4294967040 }
  0x58   :  { %577 = dma.done.wait [#allocation6], 528  }
  0x59   :  { %578 = vsyncadd [#allocation6], 4294966768 }
  0x5a   :  { %579 = dma.done.wait [#allocation9], 2064  }
  0x5b   :  { %580 = vsyncadd [#allocation9], 4294965232  ;;  %vm98_vm0 = vcmask 261120   ;;  %v87_v0 = vld [vmem:[#allocation5] sm:$0xff]  ;;  %v88_v1 = vld [vmem:[#allocation5 + $0x8] sm:$0xff]  ;;  %s590_s4 = smov [#allocation11]  }
  0x5c   :  { %v89_v2 = vld [vmem:[#allocation5 + $0x10] sm:$0xff]  ;;  %v391_v3 = vpack.c.bf16 %v88_v1, %v87_v0  ;;  %v90_v4 = vld [vmem:[#allocation5 + $0x18] sm:$0xff]  ;;  %v198_v7 = vld [vmem:[#allocation8] sm:$0xff]  ;;  %s303_s3 = sshll.u32 %s590_s4, 4  ;;  %s304_s3 = int_to_ptr.vmem [resolvable:$true] %s303_s3 }
  0x5d   :  { %v85_v5 = vld [vmem:[#allocation2] sm:$0xff]  ;;  %v395_v6 = vpack.c.bf16 %v90_v4, %v89_v2  ;;  %v86_v10 = vld [vmem:[#allocation2 + $0x8] sm:$0xff]  ;;  %v202_v14 = vld [vmem:[#allocation8 + $0x20] sm:$0xff]  ;;  %s553_s21 = scalar_lea.vmem %s304_s3, 256  ;;  %p558_p13 = scmp.lt.s32.totalorder %s304_s3, %s304_s3 }
  0x5e   :  { %353 = vmatprep.mubr.msk.f32.mxu0 %vm98_vm0, %v85_v5  ;;  %v199_v8 = vld [vmem:[#allocation8 + $0x8] sm:$0xff]  ;;  %392 = vmatprep.subr.bf16.mxu0 %v391_v3  ;;  %v200_v11 = vld [vmem:[#allocation8 + $0x10] sm:$0xff]  ;;  %v201_v12 = vld [vmem:[#allocation8 + $0x18] sm:$0xff]  ;;  %p554_p12 = scmp.ne.s32.totalorder %s304_s3, %s553_s21  ;;  %p559_p0 = scmp.lt.s32.totalorder %s553_s21, %s553_s21 }
  0x5f   :  { %v399_v9 = vpack.c.bf16 %v199_v8, %v198_v7  ;;  %394 = vmatpush3.bf16.msra.mxu0 %v391_v3  ;;  %v403_v13 = vpack.c.bf16 %v201_v12, %v200_v11  ;;  %v203_v15 = vld [vmem:[#allocation8 + $0x28] sm:$0xff]  ;;  %v204_v17 = vld [vmem:[#allocation8 + $0x30] sm:$0xff]  ;;  %v205_v18 = vld [vmem:[#allocation8 + $0x38] sm:$0xff] }
  0x60   :  { %396 = vmatprep.subr.bf16.mxu0 %v395_v6  ;;  %v407_v16 = vpack.c.bf16 %v203_v15, %v202_v14  ;;  %v411_v19 = vpack.c.bf16 %v205_v18, %v204_v17  ;;  %v206_v20 = vld [vmem:[#allocation8 + $0x40] sm:$0xff]  ;;  %v207_v21 = vld [vmem:[#allocation8 + $0x48] sm:$0xff]  ;;  %v208_v23 = vld [vmem:[#allocation8 + $0x50] sm:$0xff]  ;;  %p560_p1 = por %p559_p0, %p558_p13 }
  0x61   :  { %400 = vmatprep.subr.bf16.mxu1 %v399_v9  ;;  %v415_v22 = vpack.c.bf16 %v207_v21, %v206_v20  ;;  %v209_v24 = vld [vmem:[#allocation8 + $0x58] sm:$0xff]  ;;  %v210_v25 = vld [vmem:[#allocation8 + $0x60] sm:$0xff]  ;;  %v211_v27 = vld [vmem:[#allocation8 + $0x68] sm:$0xff] }
  0x62   :  { %402 = vmatpush3.bf16.msra.mxu1 %v399_v9  ;;  %v419_v26 = vpack.c.bf16 %v209_v24, %v208_v23  ;;  %v423_v28 = vpack.c.bf16 %v211_v27, %v210_v25  ;;  %v212_v29 = vld [vmem:[#allocation8 + $0x70] sm:$0xff]  ;;  %v213_v30 = vld [vmem:[#allocation8 + $0x78] sm:$0xff]  ;;  %v320_v55 = vld [vmem:[#allocation10] ss:$0 sm:$0xff]  ;;  %p561_p2 = pnand %p560_p1, %p554_p12 }
  0x63   :  { %398 = vmatpush3.bf16.msra.mxu0 %v395_v6  ;;  %404 = vmatprep.subr.bf16.mxu1 %v403_v13  ;;  %v427_v31 = vpack.c.bf16 %v213_v30, %v212_v29  ;;  %v317_v32 = vld [vmem:[#allocation7] ss:$0 sm:$0xff] }
  0x66   :  { %354 = vmatmul.mubr.msk.f32.vlgmr.msra.gmra.mrb[0].mxu0 %vm98_vm0, %v86_v10  ;;  %406 = vmatpush3.bf16.msra.mxu1 %v403_v13 }
  0x67   :  { %408 = vmatprep.subr.bf16.mxu1 %v407_v16 }
  0x6a   :  { %410 = vmatpush3.bf16.msra.mxu1 %v407_v16 }
  0x6b   :  { %412 = vmatprep.subr.bf16.mxu1 %v411_v19 }
  0x6e   :  { %414 = vmatpush3.bf16.msra.mxu1 %v411_v19 }
  0x6f   :  { %416 = vmatprep.subr.bf16.mxu1 %v415_v22 }
  0x72   :  { %418 = vmatpush3.bf16.msra.mxu1 %v415_v22 }
  0x73   :  { %420 = vmatprep.subr.bf16.mxu1 %v419_v26 }
  0x76   :  { %422 = vmatpush3.bf16.msra.mxu1 %v419_v26 }
  0x77   :  { %424 = vmatprep.subr.bf16.mxu1 %v423_v28 }
  0x7a   :  { %426 = vmatpush3.bf16.msra.mxu1 %v423_v28 }
  0x7b   :  { %428 = vmatprep.subr.bf16.mxu1 %v427_v31 }
  0x7e   :  { %430 = vmatpush3.bf16.msra.mxu1 %v427_v31 }
 0x139   :  { %v355_v33 = vpop.f32.mrb[0].mxu0 }
 0x13a   :  { %v177_v34 = vadd.f32 %v355_v33, %v317_v32  ;;  %v171_v35 = vpop.f32.mrb[1].mxu0 }
 0x13b   :  { %v172_v36 = vadd.f32 %v317_v32, %v171_v35 }
 0x13c   :  { %v185_v37 = vmul.f32 %v177_v34, %v177_v34  ;;  %v183_v41 = vmul.f32 0.7978846, %v177_v34  ;;  %v181_v52 = vmul.f32 0.5, %v177_v34 }
 0x13d   :  { %v184_v38 = vmul.f32 %v172_v36, %v172_v36  ;;  %v182_v43 = vmul.f32 0.7978846, %v172_v36  ;;  %v180_v50 = vmul.f32 0.5, %v172_v36 }
 0x13e   :  { %v187_v39 = vmul.f32 0.044715, %v185_v37 }
 0x13f   :  { %v186_v40 = vmul.f32 0.044715, %v184_v38 }
 0x140   :  { %v189_v42 = vadd.f32 1.0, %v187_v39 }
 0x141   :  { %v188_v44 = vadd.f32 1.0, %v186_v40 }
 0x142   :  { %v191_v45 = vmul.f32 %v189_v42, %v183_v41 }
 0x143   :  { %v190_v46 = vmul.f32 %v188_v44, %v182_v43 }
 0x144   :  { %439 = vtanh.f32 %v191_v45 }
 0x145   :  { %441 = vtanh.f32 %v190_v46 }
 0x14e   :  { %v440_v47 = vpop.eup %439 }
 0x14f   :  { %v442_v48 = vpop.eup %441  ;;  %v195_v49 = vadd.f32 1.0, %v440_v47 }
 0x150   :  { %v194_v51 = vadd.f32 1.0, %v442_v48 }
 0x151   :  { %v197_v54 = vmul.f32 %v195_v49, %v181_v52 }
 0x152   :  { %v196_v53 = vmul.f32 %v194_v51, %v180_v50 }
 0x154   :  { %388 = vmatprep.mubr.f32.mxu1 %v196_v53 }
 0x155   :  { %389 = vmatmul.mubr.f32.vlgmr.msra.gmra.mrb[0].mxu1 %v197_v54 }
 0x228   :  { %v390_v56 = vpop.f32.mrb[0].mxu1 }
 0x229   :  { %v293_v57 = vadd.f32 %v390_v56, %v320_v55  ;;  %v287_v58 = vpop.f32.mrb[1].mxu1 }
 0x22a   :  { %v288_v59 = vadd.f32 %v320_v55, %v287_v58 }
 0x22b   :  { %297 = vst.msk [vmem:[#allocation11 + $0x8] sm:$0xff] %vm98_vm0, %v293_v57 }
 0x22c   :  { %296 = vst.msk [vmem:[#allocation11] sm:$0xff] %vm98_vm0, %v288_v59 }
 0x22d   :  { %564 = shalt.err (!%p561_p2)
}
 0x22e   :  { %s565_s9 = scalar_lea.hbm %s721_s5, 256 }
 0x22f   :  { %p566_p3 = scmp.ne.s32.totalorder %s721_s5, %s565_s9  ;;  %p569_p4 = scmp.lt.u32.totalorder %s565_s9, %s721_s5 }
 0x231   :  { %p571_p5 = pnand %p569_p4, %p566_p3 }
 0x233   :  { %574 = shalt.err (!%p571_p5)
}
 0x234   :  { %309 = dma.vmem_to_hbm [thread:$0]  %s304_s3, 256, %s721_s5, [#allocation4], %s585_s30, %s585_s30, %s586_s6  }
 0x235   :  { %581 = dma.done.wait [#allocation4], 256  }
 0x236   :  { %582 = vsyncadd [#allocation4], 4294967040 }
 0x237   :  { %313 = vsyncpa [#allocation3], 1 }
 0x238   :  { %314 = vsyncpa [#allocation6], 1 }
 0x239   :  { %315 = vsyncpa [#allocation9], 1 }
 0x23a   :  { %316 = vsyncpa [#allocation4], 1 }

</bundles_post_ra>
